<compile_context>
chip_gen: v5e
topology: v5e:2x2
jax: 0.10.0
libtpu: 0.0.40
codegen_flags: <defaults>
</compile_context>

<pallas_src>
import jax
import jax.numpy as jnp
from jax.experimental import pallas as pl
from jax.experimental.pallas import tpu as pltpu


_R_PAD = 128  # LoRA rank dim padded to one full lane tile for a clean MXU epilogue


def _lora_kernel(x_ref, wt_ref, bias_ref, b_ref, ax_ref, o_ref):
    """o[i,j] = sum_k x[i,k] @ Wt[k,j]   (+ bias[j] + B[i,:] @ ax[:,j] at k==last).

    The output block is resident across the k axis and is f32, so we accumulate
    directly into o_ref (no scratch accumulator, no finalize copy).
    """
    k = pl.program_id(2)

    @pl.when(k == 0)
    def _init():
        o_ref[...] = jnp.zeros_like(o_ref)

    # Main reduction: bf16 operands, f32 accumulation on the MXU.
    o_ref[...] += jnp.dot(x_ref[...], wt_ref[...],
                          preferred_element_type=jnp.float32)

    @pl.when(k == pl.num_programs(2) - 1)
    def _epilogue():
        # Rank-128-padded LoRA correction (single bf16 vmatmul) + bias, fused
        # into the last k step so the reduction loop stays pure MXU.
        o_ref[...] += bias_ref[...] + jnp.dot(
            b_ref[...], ax_ref[...], preferred_element_type=jnp.float32)


def _round_up(v, m):
    return ((v + m - 1) // m) * m


def _pad2d(a, m0, m1):
    p0 = (-a.shape[0]) % m0
    p1 = (-a.shape[1]) % m1
    if p0 or p1:
        a = jnp.pad(a, ((0, p0), (0, p1)))
    return a


def _choose_tiles(M, N, K):
    """Big (<=512) tiles so large shapes are MXU-bound, k collapsed for
    small/medium K, and >=2 (i,j) blocks so both v7x TensorCores get work."""
    Kp = _round_up(K, 128)
    tile_k = Kp if Kp <= 1024 else 512          # no k-loop for small/medium K
    tile_m = min(512, _round_up(M, 128))
    tile_n = min(512, _round_up(N, 128))
    # Megacore-friendliness: keep at least two blocks on the parallel axes.
    if pl.cdiv(M, tile_m) * pl.cdiv(N, tile_n) < 2 and tile_m > 128:
        tile_m = max(128, _round_up(tile_m // 2, 128))
    return tile_m, tile_n, tile_k


def _vmem_limit_bytes(tile_m, tile_n, tile_k):
    per_step = (tile_m * tile_k * 2          # x tile (bf16)
                + tile_k * tile_n * 2        # W^T tile (bf16)
                + tile_n * 4                 # bias (f32)
                + tile_m * _R_PAD * 2        # B tile (bf16)
                + _R_PAD * tile_n * 2        # ax tile (bf16)
                + tile_m * tile_n * 4)       # resident f32 output tile
    need = 3 * per_step + (1 << 20)          # double-buffering + headroom
    # Floor at the 32 MiB scoped default, cap safely below v7x's 64 MiB/TC.
    return int(min(max(need, 32 << 20), 48 << 20))


def make_lora_forward(W, bias, A, B):
    """Build forward(x).  All weight-side prep (W^T, casts, padding, bias/B)
    is done ONCE here and amortised across calls."""
    out_f, in_f = W.shape
    r = A.shape[0]
    assert bias.shape == (out_f,)
    assert A.shape == (r, in_f) and B.shape == (out_f, r)
    assert in_f == out_f, "LoRALayer add is only well-formed when in == out"
    assert r <= _R_PAD, "LoRA rank > 128 not supported by this kernel"
    S, D = out_f, in_f                       # x must be (S, D) == (out_f, in_f)

    bf16, f32 = jnp.bfloat16, jnp.float32
    tile_m, tile_n, tile_k = _choose_tiles(S, out_f, in_f)

    # --- one-time weight prologue ------------------------------------------
    wt_p = _pad2d(jnp.transpose(W).astype(bf16), tile_k, tile_n)     # (Kp, Np)
    bias_p = _pad2d(bias.reshape(1, out_f).astype(f32), 1, tile_n)   # (1,  Np)
    b_p = _pad2d(B.astype(bf16), tile_m, _R_PAD)                     # (Mp, 128)
    a_bf = A.astype(bf16)                                            # (r,  K)

    Kp, Np = wt_p.shape
    Mp = b_p.shape[0]
    grid = (Mp // tile_m, Np // tile_n, Kp // tile_k)
    gi, gj, gk = grid

    flops = 2 * Mp * Np * Kp + 2 * Mp * Np * _R_PAD
    bytes_accessed = (Mp * Kp * 2 * gj          # x re-read once per j block
                      + Kp * Np * 2 * gi        # W^T re-read once per i block
                      + Np * 4 * gi             # bias re-read per i block
                      + Mp * _R_PAD * 2         # B (block index only tracks i)
                      + _R_PAD * Np * 2 * gi    # ax re-read per i block
                      + Mp * Np * 4)            # output writeback

    call = pl.pallas_call(
        _lora_kernel,
        out_shape=jax.ShapeDtypeStruct((Mp, Np), f32),
        grid_spec=pltpu.PrefetchScalarGridSpec(
            num_scalar_prefetch=0,
            grid=grid,
            in_specs=[
                pl.BlockSpec((tile_m, tile_k), lambda i, j, k: (i, k)),   # x
                pl.BlockSpec((tile_k, tile_n), lambda i, j, k: (k, j)),   # W^T
                pl.BlockSpec((1, tile_n), lambda i, j, k: (0, j)),        # bias
                pl.BlockSpec((tile_m, _R_PAD), lambda i, j, k: (i, 0)),   # B
                pl.BlockSpec((_R_PAD, tile_n), lambda i, j, k: (0, j)),   # ax
            ],
            out_specs=pl.BlockSpec((tile_m, tile_n), lambda i, j, k: (i, j)),
        ),
        compiler_params=pltpu.CompilerParams(
            dimension_semantics=("parallel", "parallel", "arbitrary"),
            vmem_limit_bytes=_vmem_limit_bytes(tile_m, tile_n, tile_k),
        ),
        cost_estimate=pl.CostEstimate(flops=flops, transcendentals=0,
                                      bytes_accessed=bytes_accessed),
    )

    def forward(x):
        assert x.shape == (S, D), "x must be (S, D) with S == in == out"
        x_bf = x.astype(bf16)
        x_p = _pad2d(x_bf, tile_m, tile_k)                        # (Mp, Kp)
        # ax = A @ x is only (r, D): computed once, reused by every output tile.
        ax = jnp.dot(a_bf, x_bf, preferred_element_type=f32)      # (r, D)
        ax_p = _pad2d(ax.astype(bf16), _R_PAD, tile_n)            # (128, Np)
        out_p = call(x_p, wt_p, bias_p, b_p, ax_p)
        return out_p[:S, :out_f]

    return forward


def lora_forward(x, W, bias, A, B):
    """One-shot convenience wrapper (re-does the weight prologue every call)."""
    return make_lora_forward(W, bias, A, B)(x)


if __name__ == "__main__":
    D = 256     # in_features == out_features == S (lane-dense: multiple of 128)
    r = 8       # LoRA rank

    key = jax.random.PRNGKey(0)
    kx, kw, kb, ka, klb = jax.random.split(key, 5)

    x = jax.random.normal(kx, (D, D), dtype=jnp.float32)
    W = jax.random.normal(kw, (D, D), dtype=jnp.float32) * 0.1    # linear.weight (out, in)
    bias = jax.random.normal(kb, (D,), dtype=jnp.float32) * 0.1   # linear.bias   (out,)
    A = jax.random.normal(ka, (r, D), dtype=jnp.float32)          # nn.Parameter(randn(r, in))
    # Module init uses B = zeros(out, r); small random values exercise the LoRA path.
    B = jax.random.normal(klb, (D, r), dtype=jnp.float32) * 0.05

    forward = jax.jit(make_lora_forward(W, bias, A, B))   # weight prep amortised
    out = jax.block_until_ready(forward(x))

    # Reference with the same bf16 quantisation the kernel applies to its MXU
    # operands (math kept in f32), so only accumulation-order differences remain.
    f32 = jnp.float32
    xq = x.astype(jnp.bfloat16).astype(f32)
    Wq = W.astype(jnp.bfloat16).astype(f32)
    Aq = A.astype(jnp.bfloat16).astype(f32)
    Bq = B.astype(jnp.bfloat16).astype(f32)
    axq = (Aq @ xq).astype(jnp.bfloat16).astype(f32)
    ref = (xq @ Wq.T + bias) + Bq @ axq
    assert out.shape == ref.shape
    assert jnp.allclose(out, ref, atol=2e-2, rtol=2e-2), "mismatch vs bf16-quantised reference"

    # Loose sanity check vs the full-f32 PyTorch-equivalent forward.
    ref_f32 = (x @ W.T + bias) + (B @ A) @ x
    assert jnp.allclose(out, ref_f32, atol=1.0, rtol=0.1), "mismatch vs f32 reference"

    print("KERNEL_OK")
</pallas_src>

<mosaic_0001>
module attributes {stable_mosaic.version = 11 : i64} {
  func.func @_lora_kernel(%arg0: i32, %arg1: i32, %arg2: i32, %arg3: memref<128x256xbf16, #tpu.memory_space<vmem>>, %arg4: memref<256x256xbf16, #tpu.memory_space<vmem>>, %arg5: memref<1x256xf32, #tpu.memory_space<vmem>>, %arg6: memref<128x128xbf16, #tpu.memory_space<vmem>>, %arg7: memref<128x256xbf16, #tpu.memory_space<vmem>>, %arg8: memref<128x256xf32, #tpu.memory_space<vmem>>) attributes {dimension_semantics = [#tpu.dimension_semantics<parallel>, #tpu.dimension_semantics<parallel>, #tpu.dimension_semantics<arbitrary>], iteration_bounds = array<i64: 2, 1, 1>, scalar_prefetch = 0 : i64, scratch_operands = 0 : i64, tpu.core_type = #tpu.core_type<tc>, window_params = [{transform_indices = @transform_0, window_bounds = array<i64: 128, 256>}, {transform_indices = @transform_1, window_bounds = array<i64: 256, 256>}, {transform_indices = @transform_2, window_bounds = array<i64: 1, 256>}, {transform_indices = @transform_3, window_bounds = array<i64: 128, 128>}, {transform_indices = @transform_4, window_bounds = array<i64: 128, 256>}, {transform_indices = @transform_5, window_bounds = array<i64: 128, 256>}]} {
    %c0_i32 = arith.constant 0 : i32
    %0 = arith.cmpi eq, %arg2, %c0_i32 : i32
    %1 = arith.extui %0 : i1 to i32
    %c0_i32_0 = arith.constant 0 : i32
    %2 = arith.cmpi ne, %1, %c0_i32_0 : i32
    scf.if %2 {
      %cst_10 = arith.constant 0.000000e+00 : f32
      %12 = vector.broadcast %cst_10 : f32 to vector<128x256xf32>
      %c0_11 = arith.constant 0 : index
      %c0_12 = arith.constant 0 : index
      %13 = vector.load %arg8[%c0_11, %c0_12] : memref<128x256xf32, #tpu.memory_space<vmem>>, vector<128x256xf32>
      tpu.vector_store %arg8[%c0_11, %c0_12], %12 {strides = array<i32>} : memref<128x256xf32, #tpu.memory_space<vmem>>, vector<128x256xf32>,
    } else {
    }
    %c0 = arith.constant 0 : index
    %c0_1 = arith.constant 0 : index
    %3 = vector.load %arg8[%c0, %c0_1] : memref<128x256xf32, #tpu.memory_space<vmem>>, vector<128x256xf32>
    %c0_2 = arith.constant 0 : index
    %c0_3 = arith.constant 0 : index
    %4 = vector.load %arg3[%c0_2, %c0_3] : memref<128x256xbf16, #tpu.memory_space<vmem>>, vector<128x256xbf16>
    %c0_4 = arith.constant 0 : index
    %c0_5 = arith.constant 0 : index
    %5 = vector.load %arg4[%c0_4, %c0_5] : memref<256x256xbf16, #tpu.memory_space<vmem>>, vector<256x256xbf16>
    %cst = arith.constant dense<0.000000e+00> : vector<128x256xf32>
    %6 = tpu.matmul %4, %5, %cst {dimension_numbers = #tpu.dot_dimension_numbers<[1], [0], [0], [1], [0, 0, 1, 1], [], []>} : vector<128x256xbf16>, vector<256x256xbf16>, vector<128x256xf32> -> vector<128x256xf32>
    %7 = arith.addf %3, %6 : vector<128x256xf32>
    %c0_6 = arith.constant 0 : index
    %c0_7 = arith.constant 0 : index
    %8 = vector.load %arg8[%c0_6, %c0_7] : memref<128x256xf32, #tpu.memory_space<vmem>>, vector<128x256xf32>
    tpu.vector_store %arg8[%c0_6, %c0_7], %7 {strides = array<i32>} : memref<128x256xf32, #tpu.memory_space<vmem>>, vector<128x256xf32>,
    %c0_i32_8 = arith.constant 0 : i32
    %9 = arith.cmpi eq, %arg2, %c0_i32_8 : i32
    %10 = arith.extui %9 : i1 to i32
    %c0_i32_9 = arith.constant 0 : i32
    %11 = arith.cmpi ne, %10, %c0_i32_9 : i32
    scf.if %11 {
      %c0_10 = arith.constant 0 : index
      %c0_11 = arith.constant 0 : index
      %12 = vector.load %arg8[%c0_10, %c0_11] : memref<128x256xf32, #tpu.memory_space<vmem>>, vector<128x256xf32>
      %c0_12 = arith.constant 0 : index
      %c0_13 = arith.constant 0 : index
      %13 = vector.load %arg5[%c0_12, %c0_13] : memref<1x256xf32, #tpu.memory_space<vmem>>, vector<1x256xf32>
      %c0_14 = arith.constant 0 : index
      %c0_15 = arith.constant 0 : index
      %14 = vector.load %arg6[%c0_14, %c0_15] : memref<128x128xbf16, #tpu.memory_space<vmem>>, vector<128x128xbf16>
      %c0_16 = arith.constant 0 : index
      %c0_17 = arith.constant 0 : index
      %15 = vector.load %arg7[%c0_16, %c0_17] : memref<128x256xbf16, #tpu.memory_space<vmem>>, vector<128x256xbf16>
      %cst_18 = arith.constant dense<0.000000e+00> : vector<128x256xf32>
      %16 = tpu.matmul %14, %15, %cst_18 {dimension_numbers = #tpu.dot_dimension_numbers<[1], [0], [0], [1], [0, 0, 1, 1], [], []>} : vector<128x128xbf16>, vector<128x256xbf16>, vector<128x256xf32> -> vector<128x256xf32>
      %17 = vector.broadcast %13 : vector<1x256xf32> to vector<128x256xf32>
      %18 = arith.addf %17, %16 : vector<128x256xf32>
      %19 = arith.addf %12, %18 : vector<128x256xf32>
      %c0_19 = arith.constant 0 : index
      %c0_20 = arith.constant 0 : index
      %20 = vector.load %arg8[%c0_19, %c0_20] : memref<128x256xf32, #tpu.memory_space<vmem>>, vector<128x256xf32>
      tpu.vector_store %arg8[%c0_19, %c0_20], %19 {strides = array<i32>} : memref<128x256xf32, #tpu.memory_space<vmem>>, vector<128x256xf32>,
    } else {
    }
    return
  }
  func.func @transform_0(%arg0: i32, %arg1: i32, %arg2: i32) -> (i32, i32) {
    %c0_i32 = arith.constant 0 : i32
    return %arg0, %arg2 : i32, i32
  }
  func.func @transform_1(%arg0: i32, %arg1: i32, %arg2: i32) -> (i32, i32) {
    %c0_i32 = arith.constant 0 : i32
    return %arg2, %arg1 : i32, i32
  }
  func.func @transform_2(%arg0: i32, %arg1: i32, %arg2: i32) -> (i32, i32) {
    %c0_i32 = arith.constant 0 : i32
    %c0_i32_0 = arith.constant 0 : i32
    return %c0_i32, %arg1 : i32, i32
  }
  func.func @transform_3(%arg0: i32, %arg1: i32, %arg2: i32) -> (i32, i32) {
    %c0_i32 = arith.constant 0 : i32
    %c0_i32_0 = arith.constant 0 : i32
    return %arg0, %c0_i32 : i32, i32
  }
  func.func @transform_4(%arg0: i32, %arg1: i32, %arg2: i32) -> (i32, i32) {
    %c0_i32 = arith.constant 0 : i32
    %c0_i32_0 = arith.constant 0 : i32
    return %c0_i32, %arg1 : i32, i32
  }
  func.func @transform_5(%arg0: i32, %arg1: i32, %arg2: i32) -> (i32, i32) {
    %c0_i32 = arith.constant 0 : i32
    return %arg0, %arg1 : i32, i32
  }
}

</mosaic_0001>

<bundles_post_ra>
// kernel: forward.1
= control target key start
LH: loop header
LB: loop body
LE: loop exit
PB: predicated region body
PF: predicated region fallthrough
CT: control target
= control target key end

     0   :  { %10 = vsyncpa [#allocation3], 0  ;;  %s2733_s0 = inlined_call_operand.vmem [shape: bf16[256,256], index: 0, kind: input, shape index: {}]   ;;  %s2734_s1 = inlined_call_operand.vmem [shape: bf16[256,256], index: 1, kind: input, shape index: {}]   ;;  %s2735_s2 = inlined_call_operand.vmem [shape: f32[1,256], index: 2, kind: input, shape index: {}]   ;;  %s2736_s3 = inlined_call_operand.vmem [shape: bf16[256,128], index: 3, kind: input, shape index: {}]   ;;  %s2737_s4 = inlined_call_operand.vmem [shape: bf16[128,256], index: 4, kind: input, shape index: {}]   ;;  %s2738_s5 = inlined_call_operand.hbm [shape: f32[256,256], index: 5, kind: output, shape index: {}]  }
   0x1   :  { %12 = vsyncpa [#allocation3 + $0x1], 0  ;;  %s2112_s18 = smov 0   ;;  %s2114_s19 = smov 0  }
   0x2   :  { %s2116_s20 = smov 0   ;;  %s2118_s21 = smov 0  }
   0x3   :  { %s2120_s22 = smov 0   ;;  %s2122_s23 = smov 0  }
   0x4 LB: > { %s1543_s24 = sadd.s32 4294967295, %s2078_s23   ;;  %s1544_s25 = sadd.s32 4294967294, %s2078_s23   ;;  %s2078_s23 = sphi %s2122_s23, %s18_s23   ;;  %s2074_s22 = sphi %s2120_s22, %s2745_s22   ;;  %s2070_s21 = sphi %s2118_s21, %s2744_s21   ;;  %s2066_s20 = sphi %s2116_s20, %s2743_s20   ;;  %s2062_s19 = sphi %s2114_s19, %s2742_s19   ;;  %s2058_s18 = sphi %s2112_s18, %s2741_s18  }
   0x5   : > { %s37_s26 = sadd.s32 1, %s2074_s22  ;;  %s180_s27 = sadd.s32 1, %s2066_s20 }
   0x6   : > { %p39_p0 = scmp.ge.s32.totalorder %s37_s26, 2  ;;  %p190_p1 = scmp.ne.s32.totalorder %s2066_s20, %s2062_s19 }
   0x7   : > { %p191_p2 = scmp.eq.s32.totalorder %s1543_s24, 1  ;;  %p196_p3 = scmp.ne.s32.totalorder %s2062_s19, %s2058_s18 }
   0x8   : > { %s2747_s26 = smov (%p39_p0, %s37_s26), 0  ;;  %p197_p5 = scmp.eq.s32.totalorder %s1544_s25, 1 }
   0x9   : > { %p2152_p4 = por %p191_p2, %p190_p1  ;;  %s175_s29 = ssub.s32 %s2074_s22, %s2747_s26 }
   0xa   : > { %p1550_p6 = scmp.ge.s32.totalorder %s2078_s23, 1  ;;  %p178_p7 = scmp.eq.s32.totalorder %s175_s29, 0 }
   0xb   : > { %p2159_p8 = por %p197_p5, %p196_p3  ;;  %p271_p9 = scmp.lt.s32.totalorder %s2078_s23, 3 }
   0xc   : > { %s2165_s6 = scalar_select %p178_p7, %s2066_s20, %s180_s27  }
   0xd   : > { %p272_p10 = pnand %p1550_p6, %p271_p9 }
   0xe   : > { %s1552_s9 = sshll.u32 (!%p272_p10), %s2070_s21, 4  ;;  %s325_s27 = sand.u32 (!%p272_p10), 1, %s2062_s19  }
   0xf   : > { %275 = sbr.rel (%p272_p10) target bundleno = 380 (0x17c), region = 40  ;;  %p330_p11 = scmp.lt.s32.totalorder (!%p272_p10), %s1552_s9, 31 }
  0x10   : > { %s1551_s29 = sshll.u32 (!%p272_p10), %s325_s27, 8  ;;  %s1925_s8 = sshll.u32 (!%p272_p10), %s2070_s21, 8 }
  0x11   : > { %s2609_s7 = scalar_lea.vmem (!%p272_p10), [#allocation2], %s1551_s29  ;;  %s1397_s13 = scalar_lea.hbm (!%p272_p10), %s2738_s5, %s1925_s8 }
  0x12   : > { %s1398_s14 = sshll.u32 (!%p272_p10), %s2609_s7, 4  ;;  %s1400_s15 = sshll.u32 (!%p272_p10), %s1397_s13, 4  ;;  %s1399_s14 = int_to_ptr.vmem [resolvable:$true] %s1398_s14  ;;  %s1401_s15 = int_to_ptr.hbm [resolvable:$true] %s1400_s15 }
  0x13   : > { %s1383_s21 = scalar_lea.sflag (!%p272_p10), [#allocation3], %s325_s27 }
  0x14   : > { %v1679_v0 = vld [vmem:[%s2734_s1 + $0x70] sm:$0xf]  ;;  %v1883_v1 = vld [vmem:[%s2734_s1 + $0x74] sm:$0xf0]  ;;  %v1671_v5 = vld [vmem:[%s2734_s1 + $0x60] sm:$0xf] }
  0x15   : > { %v1743_v2 = vld [vmem:[%s2734_s1 + $0xf0] sm:$0xf]  ;;  %v1680_v3 = vor.u32 %v1883_v1, %v1679_v0  ;;  %v1899_v4 = vld [vmem:[%s2734_s1 + $0xf4] sm:$0xf0]  ;;  %v1881_v6 = vld [vmem:[%s2734_s1 + $0x64] sm:$0xf0] }
  0x16   : > { %v1744_v7 = vor.u32 %v1899_v4, %v1743_v2  ;;  %v1735_v8 = vld [vmem:[%s2734_s1 + $0xe0] sm:$0xf]  ;;  %v1897_v9 = vld [vmem:[%s2734_s1 + $0xe4] sm:$0xf0]  ;;  %v1672_v10 = vor.u32 %v1881_v6, %v1671_v5  ;;  %v1663_v12 = vld [vmem:[%s2734_s1 + $0x50] sm:$0xf] }
  0x17   : > { %727 = vmatpush.bf16.msra.mxu0 %v1680_v3  ;;  %1926 = vmatpush.bf16.msra.mxu2 %v1680_v3  ;;  %v1736_v11 = vor.u32 %v1897_v9, %v1735_v8  ;;  %v1879_v13 = vld [vmem:[%s2734_s1 + $0x54] sm:$0xf0]  ;;  %v1727_v14 = vld [vmem:[%s2734_s1 + $0xd0] sm:$0xf]  ;;  %v1655_v18 = vld [vmem:[%s2734_s1 + $0x40] sm:$0xf] }
  0x18   : > { %1934 = vmatpush.bf16.msra.mxu3 %v1744_v7  ;;  %776 = vmatpush.bf16.msra.mxu1 %v1744_v7  ;;  %v1895_v15 = vld [vmem:[%s2734_s1 + $0xd4] sm:$0xf0]  ;;  %v1664_v16 = vor.u32 %v1879_v13, %v1663_v12  ;;  %v1877_v19 = vld [vmem:[%s2734_s1 + $0x44] sm:$0xf0]  ;;  %v1719_v20 = vld [vmem:[%s2734_s1 + $0xc0] sm:$0xf] }
  0x19   : > { %v1728_v17 = vor.u32 %v1895_v15, %v1727_v14  ;;  %v1893_v21 = vld [vmem:[%s2734_s1 + $0xc4] sm:$0xf0]  ;;  %v1656_v22 = vor.u32 %v1877_v19, %v1655_v18  ;;  %v1647_v24 = vld [vmem:[%s2734_s1 + $0x30] sm:$0xf]  ;;  %v1875_v25 = vld [vmem:[%s2734_s1 + $0x34] sm:$0xf0] }
  0x1a   : > { %v1720_v23 = vor.u32 %v1893_v21, %v1719_v20  ;;  %v1711_v26 = vld [vmem:[%s2734_s1 + $0xb0] sm:$0xf]  ;;  %v1891_v27 = vld [vmem:[%s2734_s1 + $0xb4] sm:$0xf0]  ;;  %v1648_v28 = vor.u32 %v1875_v25, %v1647_v24  ;;  %v1639_v30 = vld [vmem:[%s2734_s1 + $0x20] sm:$0xf] }
  0x1b   : > { %728 = vmatpush.bf16.msra.mxu0 %v1672_v10  ;;  %1927 = vmatpush.bf16.msra.mxu2 %v1672_v10  ;;  %v1712_v29 = vor.u32 %v1891_v27, %v1711_v26  ;;  %v1873_v31 = vld [vmem:[%s2734_s1 + $0x24] sm:$0xf0]  ;;  %s2749_s9 = smov (!%p330_p11, %s1552_s9), 31  ;;  %v1703_v32 = vld [vmem:[%s2734_s1 + $0xa0] sm:$0xf] }
  0x1c   : > { %1935 = vmatpush.bf16.msra.mxu3 %v1736_v11  ;;  %777 = vmatpush.bf16.msra.mxu1 %v1736_v11  ;;  %v1889_v33 = vld [vmem:[%s2734_s1 + $0xa4] sm:$0xf0]  ;;  %v1640_v34 = vor.u32 %v1873_v31, %v1639_v30  ;;  %v1631_v36 = vld [vmem:[%s2734_s1 + $0x10] sm:$0xf]  ;;  %v1871_v37 = vld [vmem:[%s2734_s1 + $0x14] sm:$0xf0] }
  0x1d   : > { %v1704_v35 = vor.u32 %v1889_v33, %v1703_v32  ;;  %s1851_s16 = sshll.u32 %s2749_s9, 3  ;;  %v1695_v38 = vld [vmem:[%s2734_s1 + $0x90] sm:$0xf]  ;;  %v1887_v39 = vld [vmem:[%s2734_s1 + $0x94] sm:$0xf0]  ;;  %v1632_v40 = vor.u32 %v1871_v37, %v1631_v36  ;;  %s1556_s17 = sshll.u32 %s2749_s9, 2 }
  0x1e   : > { %v1623_v41 = vld [vmem:[%s2734_s1] sm:$0xf]  ;;  %s2261_s11 = scalar_lea.vmem %s2733_s0, %s1851_s16  ;;  %v1696_v42 = vor.u32 %v1887_v39, %v1695_v38  ;;  %v1869_v43 = vld [vmem:[%s2734_s1 + $0x4] sm:$0xf0]  ;;  %v1882_v46 = vld [vmem:[%s2734_s1 + $0x74] sm:$0xf]  ;;  %s2536_s25 = scalar_lea.vmem %s2736_s3, %s1556_s17 }
  0x1f   : > { %729 = vmatpush.bf16.msra.mxu0 %v1664_v16  ;;  %1928 = vmatpush.bf16.msra.mxu2 %v1664_v16  ;;  %v1687_v44 = vld [vmem:[%s2734_s1 + $0x80] sm:$0xf]  ;;  %v1885_v45 = vld [vmem:[%s2734_s1 + $0x84] sm:$0xf0]  ;;  %v1681_v47 = vld [vmem:[%s2734_s1 + $0x78] sm:$0xf0]  ;;  %v1624_v52 = vor.u32 %v1869_v43, %v1623_v41 }
  0x20   : > { %1936 = vmatpush.bf16.msra.mxu3 %v1728_v17  ;;  %778 = vmatpush.bf16.msra.mxu1 %v1728_v17  ;;  %v1898_v48 = vld [vmem:[%s2734_s1 + $0xf4] sm:$0xf]  ;;  %v1559_v49 = vld [vmem:[%s2261_s11] sm:$0xf]  ;;  %v1853_v50 = vld [vmem:[%s2261_s11 + $0x4] sm:$0xf0]  ;;  %v1688_v58 = vor.u32 %v1885_v45, %v1687_v44  ;;  %v1684_v60 = vor.u32 %v1882_v46, %v1681_v47 }
  0x21   : > { %v1745_v51 = vld [vmem:[%s2734_s1 + $0xf8] sm:$0xf0]  ;;  %v1591_v53 = vld [vmem:[%s2261_s11 + $0x40] sm:$0xf]  ;;  %v1861_v54 = vld [vmem:[%s2261_s11 + $0x44] sm:$0xf0]  ;;  %v2307_v3 = vor.u32 %v1853_v50, %v1559_v49 }
  0x22   : > { %v1860_v55 = vld [vmem:[%s2261_s11 + $0x44] sm:$0xf]  ;;  %v1673_v57 = vld [vmem:[%s2734_s1 + $0x68] sm:$0xf0]  ;;  %v1839_v61 = vld [vmem:[%s2737_s4 + $0x70] sm:$0xf]  ;;  %v1748_v63 = vor.u32 %v1898_v48, %v1745_v51  ;;  %v2309_v4 = vor.u32 %v1861_v54, %v1591_v53 }
  0x23   : > { %730 = vmatpush.bf16.msra.mxu0 %v1656_v22  ;;  %1929 = vmatpush.bf16.msra.mxu2 %v1656_v22  ;;  %v1880_v56 = vld [vmem:[%s2734_s1 + $0x64] sm:$0xf]  ;;  %v1593_v59 = vld [vmem:[%s2261_s11 + $0x48] sm:$0xf0]  ;;  %v1923_v62 = vld [vmem:[%s2737_s4 + $0x74] sm:$0xf0] }
  0x24   : > { %1937 = vmatpush.bf16.msra.mxu3 %v1720_v23  ;;  %779 = vmatpush.bf16.msra.mxu1 %v1720_v23  ;;  %v1852_v0 = vld [vmem:[%s2261_s11 + $0x4] sm:$0xf]  ;;  %v1561_v1 = vld [vmem:[%s2261_s11 + $0x8] sm:$0xf0]  ;;  %v1922_v6 = vld [vmem:[%s2737_s4 + $0x74] sm:$0xf]  ;;  %v2320_v8 = vor.u32 %v1860_v55, %v1593_v59  ;;  %v1840_v9 = vor.u32 %v1923_v62, %v1839_v61  ;;  %v1676_v11 = vor.u32 %v1880_v56, %v1673_v57 }
  0x25   : > { %v1896_v2 = vld [vmem:[%s2734_s1 + $0xe4] sm:$0xf]  ;;  %v1737_v5 = vld [vmem:[%s2734_s1 + $0xe8] sm:$0xf0]  ;;  %v1841_v7 = vld [vmem:[%s2737_s4 + $0x78] sm:$0xf0]  ;;  %v2322_v10 = vor.u32 %v1852_v0, %v1561_v1 }
  0x26   : > { %v1831_v12 = vld [vmem:[%s2737_s4 + $0x60] sm:$0xf]  ;;  %v1921_v13 = vld [vmem:[%s2737_s4 + $0x64] sm:$0xf0]  ;;  %v1740_v14 = vor.u32 %v1896_v2, %v1737_v5  ;;  %v1878_v15 = vld [vmem:[%s2734_s1 + $0x54] sm:$0xf]  ;;  %v1844_v18 = vor.u32 %v1922_v6, %v1841_v7 }
  0x27   : > { %731 = vmatpush.bf16.msra.mxu0 %v1648_v28  ;;  %1930 = vmatpush.bf16.msra.mxu2 %v1648_v28  ;;  %v1665_v16 = vld [vmem:[%s2734_s1 + $0x58] sm:$0xf0]  ;;  %v1894_v17 = vld [vmem:[%s2734_s1 + $0xd4] sm:$0xf]  ;;  %v1920_v20 = vld [vmem:[%s2737_s4 + $0x64] sm:$0xf]  ;;  %v1832_v22 = vor.u32 %v1921_v13, %v1831_v12 }
  0x28   : > { %1938 = vmatpush.bf16.msra.mxu3 %v1712_v29  ;;  %780 = vmatpush.bf16.msra.mxu1 %v1712_v29  ;;  %v1729_v19 = vld [vmem:[%s2734_s1 + $0xd8] sm:$0xf0]  ;;  %v1833_v21 = vld [vmem:[%s2737_s4 + $0x68] sm:$0xf0]  ;;  %v1668_v23 = vor.u32 %v1878_v15, %v1665_v16  ;;  %v1823_v24 = vld [vmem:[%s2737_s4 + $0x50] sm:$0xf] }
  0x29   : > { %v1919_v25 = vld [vmem:[%s2737_s4 + $0x54] sm:$0xf0]  ;;  %v1732_v26 = vor.u32 %v1894_v17, %v1729_v19  ;;  %v1876_v27 = vld [vmem:[%s2734_s1 + $0x44] sm:$0xf]  ;;  %v1657_v28 = vld [vmem:[%s2734_s1 + $0x48] sm:$0xf0]  ;;  %v1836_v30 = vor.u32 %v1920_v20, %v1833_v21 }
  0x2a   : > { %v1892_v29 = vld [vmem:[%s2734_s1 + $0xc4] sm:$0xf]  ;;  %v1721_v31 = vld [vmem:[%s2734_s1 + $0xc8] sm:$0xf0]  ;;  %v1918_v32 = vld [vmem:[%s2737_s4 + $0x54] sm:$0xf] }
  0x2b   : > { %732 = vmatpush.bf16.msra.mxu0 %v1640_v34  ;;  %1931 = vmatpush.bf16.msra.mxu2 %v1640_v34  ;;  %v1825_v33 = vld [vmem:[%s2737_s4 + $0x58] sm:$0xf0]  ;;  %v1824_v34 = vor.u32 %v1919_v25, %v1823_v24  ;;  %v1815_v36 = vld [vmem:[%s2737_s4 + $0x40] sm:$0xf]  ;;  %v1917_v37 = vld [vmem:[%s2737_s4 + $0x44] sm:$0xf0]  ;;  %v1724_v39 = vor.u32 %v1892_v29, %v1721_v31 }
  0x2c   : > { %1939 = vmatpush.bf16.msra.mxu3 %v1704_v35  ;;  %781 = vmatpush.bf16.msra.mxu1 %v1704_v35  ;;  %v1660_v35 = vor.u32 %v1876_v27, %v1657_v28  ;;  %v1567_v38 = vld [vmem:[%s2261_s11 + $0x10] sm:$0xf]  ;;  %v1649_v41 = vld [vmem:[%s2734_s1 + $0x38] sm:$0xf0]  ;;  %v1828_v43 = vor.u32 %v1918_v32, %v1825_v33  ;;  %v1916_v45 = vld [vmem:[%s2737_s4 + $0x44] sm:$0xf]  ;;  %v1816_v50 = vor.u32 %v1917_v37, %v1815_v36 }
  0x2d   : > { %v1713_v44 = vld [vmem:[%s2734_s1 + $0xb8] sm:$0xf0]  ;;  %v1817_v46 = vld [vmem:[%s2737_s4 + $0x48] sm:$0xf0]  ;;  %v1855_v47 = vld [vmem:[%s2261_s11 + $0x14] sm:$0xf0] }
  0x2e   : > { %v1599_v48 = vld [vmem:[%s2261_s11 + $0x50] sm:$0xf]  ;;  %v1863_v49 = vld [vmem:[%s2261_s11 + $0x54] sm:$0xf0]  ;;  %v1862_v51 = vld [vmem:[%s2261_s11 + $0x54] sm:$0xf]  ;;  %v1820_v59 = vor.u32 %v1916_v45, %v1817_v46 }
  0x2f   : > { %733 = vmatpush.bf16.msra.mxu0 %v1632_v40  ;;  %1932 = vmatpush.bf16.msra.mxu2 %v1632_v40  ;;  %v1874_v40 = vld [vmem:[%s2734_s1 + $0x34] sm:$0xf]  ;;  %v1569_v55 = vld [vmem:[%s2261_s11 + $0x18] sm:$0xf0]  ;;  %v1872_v57 = vld [vmem:[%s2734_s1 + $0x24] sm:$0xf]  ;;  %v2416_v61 = vor.u32 %v1863_v49, %v1599_v48 }
  0x30   : > { %1940 = vmatpush.bf16.msra.mxu3 %v1696_v42  ;;  %782 = vmatpush.bf16.msra.mxu1 %v1696_v42  ;;  %v1890_v42 = vld [vmem:[%s2734_s1 + $0xb4] sm:$0xf]  ;;  %v1652_v54 = vor.u32 %v1874_v40, %v1649_v41  ;;  %v1888_v62 = vld [vmem:[%s2734_s1 + $0xa4] sm:$0xf]  ;;  %v1807_v6 = vld [vmem:[%s2737_s4 + $0x30] sm:$0xf] }
  0x31   : > { %v1854_v53 = vld [vmem:[%s2261_s11 + $0x14] sm:$0xf]  ;;  %v1716_v56 = vor.u32 %v1890_v42, %v1713_v44  ;;  %v1915_v7 = vld [vmem:[%s2737_s4 + $0x34] sm:$0xf0]  ;;  %v1697_v15 = vld [vmem:[%s2734_s1 + $0x98] sm:$0xf0] }
  0x32   : > { %v2426_v1 = vor.u32 %v1854_v53, %v1569_v55  ;;  %v1886_v12 = vld [vmem:[%s2734_s1 + $0x94] sm:$0xf]  ;;  %v1808_v13 = vor.u32 %v1915_v7, %v1807_v6  ;;  %v1809_v17 = vld [vmem:[%s2737_s4 + $0x38] sm:$0xf0]  ;;  %v1799_v20 = vld [vmem:[%s2737_s4 + $0x20] sm:$0xf] }
  0x33   : > { %734 = vmatpush.bf16.msra.mxu0 %v1624_v52  ;;  %1933 = vmatpush.bf16.msra.mxu2 %v1624_v52  ;;  %v1601_v52 = vld [vmem:[%s2261_s11 + $0x58] sm:$0xf0]  ;;  %v1914_v16 = vld [vmem:[%s2737_s4 + $0x34] sm:$0xf]  ;;  %v1913_v21 = vld [vmem:[%s2737_s4 + $0x24] sm:$0xf0] }
  0x34   : > { %1941 = vmatpush.bf16.msra.mxu3 %v1688_v58  ;;  %783 = vmatpush.bf16.msra.mxu1 %v1688_v58  ;;  %v1641_v58 = vld [vmem:[%s2734_s1 + $0x28] sm:$0xf0]  ;;  %v2424_v0 = vor.u32 %v1862_v51, %v1601_v52  ;;  %v1812_v19 = vor.u32 %v1914_v16, %v1809_v17  ;;  %v1884_v25 = vld [vmem:[%s2734_s1 + $0x84] sm:$0xf]  ;;  %v1911_v31 = vld [vmem:[%s2737_s4 + $0x14] sm:$0xf0] }
  0x35   : > { %v1644_v2 = vor.u32 %v1872_v57, %v1641_v58  ;;  %v1625_v24 = vld [vmem:[%s2734_s1 + $0x8] sm:$0xf0]  ;;  %v1912_v27 = vld [vmem:[%s2737_s4 + $0x24] sm:$0xf]  ;;  %v1575_v32 = vld [vmem:[%s2261_s11 + $0x20] sm:$0xf] }
  0x36   : > { %735 = vmatmul.bf16.vlgmr.msra.gmra.mxu0 %v2307_v3  ;;  %755 = vmatmul.bf16.vlgmr.msra.gmra.mxu2 %v2309_v4  ;;  %v1801_v29 = vld [vmem:[%s2737_s4 + $0x28] sm:$0xf0]  ;;  %v1783_v36 = vld [vmem:[%s2737_s4] sm:$0xf]  ;;  %v1909_v37 = vld [vmem:[%s2737_s4 + $0x4] sm:$0xf0] }
  0x37   : > { %825 = vmatpush.bf16.msrb.mxu2 %v1684_v60  ;;  %804 = vmatmul.bf16.vlgmr.msra.gmra.mxu3 %v2320_v8  ;;  %v2414_v60 = vor.u32 %v1855_v47, %v1567_v38  ;;  %v1910_v38 = vld [vmem:[%s2737_s4 + $0x14] sm:$0xf]  ;;  %v1857_v40 = vld [vmem:[%s2261_s11 + $0x24] sm:$0xf0]  ;;  %v1607_v41 = vld [vmem:[%s2261_s11 + $0x60] sm:$0xf]  ;;  %v1784_v48 = vor.u32 %v1909_v37, %v1783_v36 }
  0x38   : > { %874 = vmatpush.bf16.msrb.mxu3 %v1748_v63  ;;  %1183 = vmatpush.bf16.msrb.mxu0 %v1840_v9  ;;  %v1705_v63 = vld [vmem:[%s2734_s1 + $0xa8] sm:$0xf0]  ;;  %v1870_v9 = vld [vmem:[%s2734_s1 + $0x14] sm:$0xf]  ;;  %v1865_v42 = vld [vmem:[%s2261_s11 + $0x64] sm:$0xf0]  ;;  %v1576_v49 = vor.u32 %v1857_v40, %v1575_v32 }
  0x39   : > { %784 = vmatmul.bf16.vlgmr.msra.gmra.mxu1 %v2322_v10  ;;  %v1708_v5 = vor.u32 %v1888_v62, %v1705_v63  ;;  %v1864_v44 = vld [vmem:[%s2261_s11 + $0x64] sm:$0xf]  ;;  %v1609_v45 = vld [vmem:[%s2261_s11 + $0x68] sm:$0xf0]  ;;  %v1859_v57 = vld [vmem:[%s2261_s11 + $0x34] sm:$0xf0] }
  0x3a   : > { %1232 = vmatpush.bf16.msrb.mxu1 %v1844_v18  ;;  %v1700_v18 = vor.u32 %v1886_v12, %v1697_v15  ;;  %v1856_v46 = vld [vmem:[%s2261_s11 + $0x24] sm:$0xf]  ;;  %v1577_v47 = vld [vmem:[%s2261_s11 + $0x28] sm:$0xf0]  ;;  %v2514_v53 = vor.u32 %v1864_v44, %v1609_v45  ;;  %v1615_v58 = vld [vmem:[%s2261_s11 + $0x70] sm:$0xf] }
  0x3b   : > { %826 = vmatpush.bf16.msrb.mxu2 %v1676_v11  ;;  %v1633_v11 = vld [vmem:[%s2734_s1 + $0x18] sm:$0xf0]  ;;  %v1908_v51 = vld [vmem:[%s2737_s4 + $0x4] sm:$0xf]  ;;  %v1785_v52 = vld [vmem:[%s2737_s4 + $0x8] sm:$0xf0]  ;;  %v1580_v55 = vor.u32 %v1856_v46, %v1577_v47 }
  0x3c   : > { %875 = vmatpush.bf16.msrb.mxu3 %v1740_v14  ;;  %1184 = vmatpush.bf16.msrb.mxu0 %v1832_v22  ;;  %v1636_v14 = vor.u32 %v1870_v9, %v1633_v11  ;;  %v1800_v22 = vor.u32 %v1913_v21, %v1799_v20  ;;  %v1866_v62 = vld [vmem:[%s2261_s11 + $0x74] sm:$0xf]  ;;  %v1617_v63 = vld [vmem:[%s2261_s11 + $0x78] sm:$0xf0]  ;;  %v1900_v12 = vld [vmem:[%s2536_s25] sm:$0xff]  ;;  %s2014_s17 = sshra.s32 %s1401_s15, 4  ;;  %s2015_s17 = int_to_ptr.hbm [resolvable:$true] %s2014_s17 }
  0x3d   : > { %v2528_v9 = vor.u32 %v1866_v62, %v1617_v63  ;;  %v1903_v15 = vld [vmem:[%s2536_s25 + $0x18] sm:$0xff]  ;;  %s2016_s24 = scalar_lea.hbm %s2015_s17, 256  ;;  %s2020_s9 = scalar_lea.hbm %s2738_s5, 512 }
  0x3e   : > { %1233 = vmatpush.bf16.msrb.mxu1 %v1836_v30  ;;  %v1791_v30 = vld [vmem:[%s2737_s4 + $0x10] sm:$0xf]  ;;  %v1907_v40 = vld [vmem:[%s2536_s25 + $0x38] sm:$0xff]  ;;  %p2017_p12 = scmp.ne.s32.totalorder %s2015_s17, %s2016_s24  ;;  %p2021_p1 = scmp.lt.s32.totalorder %s2015_s17, %s2738_s5 }
  0x3f   : > { %827 = vmatpush.bf16.msrb.mxu2 %v1668_v23  ;;  %v1868_v23 = vld [vmem:[%s2734_s1 + $0x4] sm:$0xf]  ;;  %p2022_p2 = scmp.lt.s32.totalorder %s2020_s9, %s2016_s24 }
  0x40   : > { %876 = vmatpush.bf16.msrb.mxu3 %v1732_v26  ;;  %1185 = vmatpush.bf16.msrb.mxu0 %v1824_v34  ;;  %v1689_v26 = vld [vmem:[%s2734_s1 + $0x88] sm:$0xf0]  ;;  %v1628_v28 = vor.u32 %v1868_v23, %v1625_v24  ;;  %v1804_v34 = vor.u32 %v1912_v27, %v1801_v29  ;;  %p2018_p13 = pnand %p2017_p12, %p2152_p4 }
  0x41   : > { %v1692_v33 = vor.u32 %v1884_v25, %v1689_v26  ;;  %p2023_p3 = por %p2022_p2, %p2021_p1 }
  0x42   : > { %1234 = vmatpush.bf16.msrb.mxu1 %v1828_v43  ;;  %p2019_p0 = pneg %p2018_p13 }
  0x43   : > { %828 = vmatpush.bf16.msrb.mxu2 %v1660_v35  ;;  %v1792_v35 = vor.u32 %v1911_v31, %v1791_v30  ;;  %v1906_v31 = vld [vmem:[%s2536_s25 + $0x30] sm:$0xff] }
  0x44   : > { %877 = vmatpush.bf16.msrb.mxu3 %v1724_v39  ;;  %1186 = vmatpush.bf16.msrb.mxu0 %v1816_v50  ;;  %v1793_v39 = vld [vmem:[%s2737_s4 + $0x18] sm:$0xf0]  ;;  %v2506_v50 = vor.u32 %v1865_v42, %v1607_v41  ;;  %p2024_p5 = pnand %p2023_p3, %p2019_p0 }
  0x45   : > { %v1796_v43 = vor.u32 %v1910_v38, %v1793_v39 }
  0x46   : > { %1235 = vmatpush.bf16.msrb.mxu1 %v1820_v59  ;;  %740 = vmatmul.bf16.gmra.mxu0 %v2414_v60  ;;  %v1867_v59 = vld [vmem:[%s2261_s11 + $0x74] sm:$0xf0] }
  0x47   : > { %829 = vmatpush.bf16.msrb.mxu2 %v1652_v54  ;;  %809 = vmatmul.bf16.gmra.mxu3 %v2424_v0  ;;  %v1788_v54 = vor.u32 %v1908_v51, %v1785_v52  ;;  %v2526_v7 = vor.u32 %v1867_v59, %v1615_v58 }
  0x48   : > { %878 = vmatpush.bf16.msrb.mxu3 %v1716_v56  ;;  %760 = vmatmul.bf16.gmra.mxu2 %v2416_v61  ;;  %v1583_v56 = vld [vmem:[%s2261_s11 + $0x30] sm:$0xf] }
  0x49   : > { %789 = vmatmul.bf16.gmra.mxu1 %v2426_v1  ;;  %1187 = vmatpush.bf16.msrb.mxu0 %v1808_v13  ;;  %v1584_v6 = vor.u32 %v1859_v57, %v1583_v56  ;;  %v1901_v13 = vld [vmem:[%s2536_s25 + $0x8] sm:$0xff] }
  0x4a   : > { %1236 = vmatpush.bf16.msrb.mxu1 %v1812_v19 }
  0x4b   : > { %830 = vmatpush.bf16.msrb.mxu2 %v1644_v2  ;;  %v1858_v2 = vld [vmem:[%s2261_s11 + $0x34] sm:$0xf] }
  0x4c   : > { %879 = vmatpush.bf16.msrb.mxu3 %v1708_v5  ;;  %v1585_v5 = vld [vmem:[%s2261_s11 + $0x38] sm:$0xf0] }
  0x4d   : > { %1188 = vmatpush.bf16.msrb.mxu0 %v1800_v22  ;;  %v1588_v11 = vor.u32 %v1858_v2, %v1585_v5  ;;  %v1905_v22 = vld [vmem:[%s2536_s25 + $0x28] sm:$0xff] }
  0x4e   : > { %1237 = vmatpush.bf16.msrb.mxu1 %v1804_v34 }
  0x4f   : > { %831 = vmatpush.bf16.msrb.mxu2 %v1636_v14  ;;  %v1902_v14 = vld [vmem:[%s2536_s25 + $0x10] sm:$0xff] }
  0x50   : > { %880 = vmatpush.bf16.msrb.mxu3 %v1700_v18 }
  0x51   : > { %1189 = vmatpush.bf16.msrb.mxu0 %v1792_v35 }
  0x52   : > { %1238 = vmatpush.bf16.msrb.mxu1 %v1796_v43 }
  0x53   : > { %832 = vmatpush.bf16.msrb.mxu2 %v1628_v28 }
  0x54   : > { %881 = vmatpush.bf16.msrb.mxu3 %v1692_v33 }
  0x55   : > { %1190 = vmatpush.bf16.msrb.mxu0 %v1784_v48 }
  0x56   : > { %745 = vmatmul.bf16.gmra.mxu0 %v1576_v49  ;;  %1239 = vmatpush.bf16.msrb.mxu1 %v1788_v54 }
  0x57   : > { %814 = vmatmul.bf16.gmra.mxu3 %v2514_v53 }
  0x58   : > { %765 = vmatmul.bf16.gmra.mxu2 %v2506_v50 }
  0x59   : > { %794 = vmatmul.bf16.gmra.mxu1 %v1580_v55 }
  0x66   : > { %750 = vmatmul.bf16.gmra.mxu0 %v1584_v6 }
  0x67   : > { %819 = vmatmul.bf16.gmra.mxu3 %v2528_v9 }
  0x68   : > { %770 = vmatmul.bf16.gmra.mxu2 %v2526_v7 }
  0x69   : > { %799 = vmatmul.bf16.gmra.mxu1 %v1588_v11 }
  0x76   : > { %1191 = vmatmul.bf16.vlgmr.msrb.gmra.mxu0 %v1900_v12 }
  0x77   : > { %882 = vmatmul.bf16.vlgmr.msrb.gmra.mxu3 %v2322_v10 }
  0x78   : > { %833 = vmatmul.bf16.vlgmr.msrb.gmra.mxu2 %v2307_v3  ;;  %v1904_v3 = vld [vmem:[%s2536_s25 + $0x20] sm:$0xff] }
  0x79   : > { %1240 = vmatmul.bf16.vlgmr.msrb.gmra.mxu1 %v1900_v12 }
  0x86   : > { %1196 = vmatmul.bf16.gmra.mxu0 %v1901_v13 }
  0x87   : > { %887 = vmatmul.bf16.gmra.mxu3 %v2426_v1 }
  0x88   : > { %838 = vmatmul.bf16.gmra.mxu2 %v2414_v60 }
  0x89   : > { %1245 = vmatmul.bf16.gmra.mxu1 %v1901_v13 }
  0x96   : > { %1201 = vmatmul.bf16.gmra.mxu0 %v1902_v14 }
  0x97   : > { %892 = vmatmul.bf16.gmra.mxu3 %v1580_v55 }
  0x98   : > { %843 = vmatmul.bf16.gmra.mxu2 %v1576_v49  ;;  %v1022_v49 = vld [vmem:[%s2735_s2] sm:$0x3] }
  0x99   : > { %1250 = vmatmul.bf16.gmra.mxu1 %v1902_v14  ;;  %v2600_v51 = vperm.slane %v1022_v49, 0  ;;  %v2607_v59 = vperm.slane %v1022_v49, 1 }
  0xa6   : > { %1206 = vmatmul.bf16.gmra.mxu0 %v1903_v15 }
  0xa7   : > { %897 = vmatmul.bf16.gmra.mxu3 %v1588_v11 }
  0xa8   : > { %848 = vmatmul.bf16.gmra.mxu2 %v1584_v6 }
  0xa9   : > { %1255 = vmatmul.bf16.gmra.mxu1 %v1903_v15 }
  0xb3   : > { %v736_v10 = vpop.f32.mrf.mxu0 }
  0xb6   : > { %v785_v16 = vpop.f32.mrf.mxu1  ;;  %1211 = vmatmul.bf16.gmra.mxu0 %v1904_v3 }
  0xb7   : > { %902 = vmatmul.bf16.gmra.mxu3 %v2320_v8 }
  0xb8   : > { %853 = vmatmul.bf16.gmra.mxu2 %v2309_v4 }
  0xb9   : > { %1260 = vmatmul.bf16.gmra.mxu1 %v1904_v3  ;;  %v756_v60 = vpop.f32.mrf.mxu2 }
  0xba   : > { %v805_v1 = vpop.f32.mrf.mxu3 }
  0xbb   : > { %v2549_v17 = vadd.f32 %v805_v1, %v756_v60  ;;  %v738_v18 = vpop.f32.mrf.mxu0 }
  0xbe   : > { %v787_v19 = vpop.f32.mrf.mxu1 }
  0xbf   : > { %v788_v62 = vadd.f32 %v787_v19, %v738_v18 }
  0xc1   : > { %v758_v20 = vpop.f32.mrf.mxu2 }
  0xc2   : > { %v807_v21 = vpop.f32.mrf.mxu3 }
  0xc3   : > { %v2552_v23 = vadd.f32 %v807_v21, %v758_v20  ;;  %v2554_v24 = vpop.f32.mrf.mxu0 }
  0xc6   : > { %v2556_v25 = vpop.f32.mrf.mxu1  ;;  %1216 = vmatmul.bf16.gmra.mxu0 %v1905_v22 }
  0xc7   : > { %907 = vmatmul.bf16.gmra.mxu3 %v2424_v0  ;;  %v791_v14 = vadd.f32 %v2556_v25, %v2554_v24 }
  0xc8   : > { %858 = vmatmul.bf16.gmra.mxu2 %v2416_v61 }
  0xc9   : > { %1265 = vmatmul.bf16.gmra.mxu1 %v1905_v22 }
  0xca   : > { %v810_v8 = vpop.f32.mrf.mxu3 }
  0xcb   : > { %v761_v4 = vpop.f32.mrf.mxu2  ;;  %v2562_v27 = vpop.f32.mrf.mxu0 }
  0xcc   : > { %v2560_v26 = vadd.f32 %v810_v8, %v761_v4 }
  0xce   : > { %v2564_v28 = vpop.f32.mrf.mxu1 }
  0xcf   : > { %v793_v21 = vadd.f32 %v2564_v28, %v2562_v27 }
  0xd2   : > { %v812_v30 = vpop.f32.mrf.mxu3 }
  0xd3   : > { %v763_v29 = vpop.f32.mrf.mxu2  ;;  %v2569_v33 = vpop.f32.mrf.mxu0 }
  0xd4   : > { %v2567_v32 = vadd.f32 %v812_v30, %v763_v29 }
  0xd6   : > { %v2571_v61 = vpop.f32.mrf.mxu1  ;;  %1221 = vmatmul.bf16.gmra.mxu0 %v1906_v31 }
  0xd7   : > { %912 = vmatmul.bf16.gmra.mxu3 %v2514_v53 }
  0xd8   : > { %863 = vmatmul.bf16.gmra.mxu2 %v2506_v50  ;;  %v786_v50 = vadd.f32 %v785_v16, %v736_v10 }
  0xd9   : > { %1270 = vmatmul.bf16.gmra.mxu1 %v1906_v31 }
  0xda   : > { %v815_v34 = vpop.f32.mrf.mxu3 }
  0xdb   : > { %v766_v0 = vpop.f32.mrf.mxu2  ;;  %v2577_v36 = vpop.f32.mrf.mxu0 }
  0xdc   : > { %v2575_v35 = vadd.f32 %v815_v34, %v766_v0  ;;  %v796_v34 = vadd.f32 %v2571_v61, %v2569_v33 }
  0xde   : > { %v2579_v37 = vpop.f32.mrf.mxu1 }
  0xe2   : > { %v817_v39 = vpop.f32.mrf.mxu3 }
  0xe3   : > { %v768_v38 = vpop.f32.mrf.mxu2  ;;  %v2584_v42 = vpop.f32.mrf.mxu0 }
  0xe4   : > { %v2582_v41 = vadd.f32 %v817_v39, %v768_v38 }
  0xe6   : > { %v2586_v43 = vpop.f32.mrf.mxu1  ;;  %1226 = vmatmul.bf16.gmra.mxu0 %v1907_v40 }
  0xe7   : > { %917 = vmatmul.bf16.gmra.mxu3 %v2528_v9 }
  0xe8   : > { %868 = vmatmul.bf16.gmra.mxu2 %v2526_v7 }
  0xe9   : > { %1275 = vmatmul.bf16.gmra.mxu1 %v1907_v40 }
  0xea   : > { %v820_v45 = vpop.f32.mrf.mxu3 }
  0xeb   : > { %v771_v44 = vpop.f32.mrf.mxu2  ;;  %v2592_v47 = vpop.f32.mrf.mxu0 }
  0xec   : > { %v2590_v46 = vadd.f32 %v820_v45, %v771_v44 }
  0xee   : > { %v2594_v48 = vpop.f32.mrf.mxu1 }
  0xf2   : > { %v822_v53 = vpop.f32.mrf.mxu3 }
  0xf3   : > { %v773_v52 = vpop.f32.mrf.mxu2  ;;  %v1192_v55 = vpop.f32.mrf.mxu0 }
  0xf4   : > { %v2604_v54 = vadd.f32 %v822_v53, %v773_v52  ;;  %v1286_v56 = vadd.f32 %v2600_v51, %v1192_v55  ;;  %v798_v52 = vadd.f32 %v2579_v37, %v2577_v36 }
  0xf6   : > { %v1241_v57 = vpop.f32.mrf.mxu1  ;;  %v1318_v58 = vadd.f32 %v1286_v56, %v786_v50 }
  0xf7   : > { %v1287_v7 = vadd.f32 %v2607_v59, %v1241_v57 }
  0xf8   : > { %1350 = vst [vmem:[%s2609_s7] sm:$0xff] %v1318_v58 }
  0xfa   : > { %v883_v2 = vpop.f32.mrf.mxu3 }
  0xfb   : > { %v834_v63 = vpop.f32.mrf.mxu2  ;;  %v1194_v6 = vpop.f32.mrf.mxu0 }
  0xfc   : > { %v884_v5 = vadd.f32 %v883_v2, %v834_v63  ;;  %v1288_v9 = vadd.f32 %v2600_v51, %v1194_v6  ;;  %v801_v2 = vadd.f32 %v2586_v43, %v2584_v42 }
  0xfe   : > { %v1243_v11 = vpop.f32.mrf.mxu1  ;;  %v1320_v12 = vadd.f32 %v1288_v9, %v788_v62  ;;  %v1319_v13 = vadd.f32 %v1287_v7, %v884_v5 }
  0xff   : > { %v1289_v1 = vadd.f32 %v2607_v59, %v1243_v11 }
 0x100   : > { %1352 = vst [vmem:[%s2609_s7 + $0x10] sm:$0xff] %v1320_v12 }
 0x101   : > { %1351 = vst [vmem:[%s2609_s7 + $0x8] sm:$0xff] %v1319_v13 }
 0x102   : > { %v885_v3 = vpop.f32.mrf.mxu3 }
 0x103   : > { %v836_v15 = vpop.f32.mrf.mxu2  ;;  %v1197_v16 = vpop.f32.mrf.mxu0 }
 0x104   : > { %v886_v10 = vadd.f32 %v885_v3, %v836_v15  ;;  %v1290_v60 = vadd.f32 %v2600_v51, %v1197_v16 }
 0x106   : > { %v1246_v18 = vpop.f32.mrf.mxu1  ;;  %v1322_v19 = vadd.f32 %v1290_v60, %v791_v14  ;;  %v1321_v20 = vadd.f32 %v1289_v1, %v886_v10  ;;  %v803_v14 = vadd.f32 %v2594_v48, %v2592_v47 }
 0x107   : > { %v1291_v8 = vadd.f32 %v2607_v59, %v1246_v18 }
 0x108   : > { %1354 = vst [vmem:[%s2609_s7 + $0x20] sm:$0xff] %v1322_v19 }
 0x109   : > { %1353 = vst [vmem:[%s2609_s7 + $0x18] sm:$0xff] %v1321_v20 }
 0x10a   : > { %v888_v24 = vpop.f32.mrf.mxu3 }
 0x10b   : > { %v839_v22 = vpop.f32.mrf.mxu2  ;;  %v1199_v4 = vpop.f32.mrf.mxu0 }
 0x10c   : > { %v889_v25 = vadd.f32 %v888_v24, %v839_v22  ;;  %v1292_v29 = vadd.f32 %v2600_v51, %v1199_v4 }
 0x10e   : > { %v1248_v30 = vpop.f32.mrf.mxu1  ;;  %v1324_v31 = vadd.f32 %v1292_v29, %v793_v21  ;;  %v1323_v0 = vadd.f32 %v1291_v8, %v889_v25 }
 0x10f   : > { %v1293_v44 = vadd.f32 %v2607_v59, %v1248_v30 }
 0x110   : > { %1356 = vst [vmem:[%s2609_s7 + $0x30] sm:$0xff] %v1324_v31 }
 0x111   : > { %1355 = vst [vmem:[%s2609_s7 + $0x28] sm:$0xff] %v1323_v0 }
 0x112   : > { %v890_v28 = vpop.f32.mrf.mxu3 }
 0x113   : > { %v841_v27 = vpop.f32.mrf.mxu2  ;;  %v1202_v39 = vpop.f32.mrf.mxu0 }
 0x114   : > { %v891_v38 = vadd.f32 %v890_v28, %v841_v27  ;;  %v1294_v40 = vadd.f32 %v2600_v51, %v1202_v39 }
 0x116   : > { %v1251_v45 = vpop.f32.mrf.mxu1  ;;  %v1326_v49 = vadd.f32 %v1294_v40, %v796_v34  ;;  %v1325_v50 = vadd.f32 %v1293_v44, %v891_v38 }
 0x117   : > { %v1295_v56 = vadd.f32 %v2607_v59, %v1251_v45 }
 0x118   : > { %1358 = vst [vmem:[%s2609_s7 + $0x40] sm:$0xff] %v1326_v49 }
 0x119   : > { %1357 = vst [vmem:[%s2609_s7 + $0x38] sm:$0xff] %v1325_v50 }
 0x11a   : > { %v893_v61 = vpop.f32.mrf.mxu3 }
 0x11b   : > { %v844_v33 = vpop.f32.mrf.mxu2  ;;  %v1204_v55 = vpop.f32.mrf.mxu0 }
 0x11c   : > { %v894_v53 = vadd.f32 %v893_v61, %v844_v33  ;;  %v1296_v57 = vadd.f32 %v2600_v51, %v1204_v55 }
 0x11e   : > { %v1253_v58 = vpop.f32.mrf.mxu1  ;;  %v1328_v62 = vadd.f32 %v1296_v57, %v798_v52  ;;  %v1327_v63 = vadd.f32 %v1295_v56, %v894_v53 }
 0x11f   : > { %v1297_v9 = vadd.f32 %v2607_v59, %v1253_v58 }
 0x120   : > { %1360 = vst [vmem:[%s2609_s7 + $0x50] sm:$0xff] %v1328_v62 }
 0x121   : > { %1359 = vst [vmem:[%s2609_s7 + $0x48] sm:$0xff] %v1327_v63 }
 0x122   : > { %v895_v37 = vpop.f32.mrf.mxu3 }
 0x123   : > { %v846_v36 = vpop.f32.mrf.mxu2  ;;  %v1207_v6 = vpop.f32.mrf.mxu0 }
 0x124   : > { %v896_v5 = vadd.f32 %v895_v37, %v846_v36  ;;  %v1298_v7 = vadd.f32 %v2600_v51, %v1207_v6 }
 0x126   : > { %v1256_v11 = vpop.f32.mrf.mxu1  ;;  %v1330_v12 = vadd.f32 %v1298_v7, %v801_v2  ;;  %v1329_v13 = vadd.f32 %v1297_v9, %v896_v5 }
 0x127   : > { %v1299_v10 = vadd.f32 %v2607_v59, %v1256_v11 }
 0x128   : > { %1362 = vst [vmem:[%s2609_s7 + $0x60] sm:$0xff] %v1330_v12 }
 0x129   : > { %1361 = vst [vmem:[%s2609_s7 + $0x58] sm:$0xff] %v1329_v13 }
 0x12a   : > { %v898_v43 = vpop.f32.mrf.mxu3 }
 0x12b   : > { %v849_v42 = vpop.f32.mrf.mxu2  ;;  %v1209_v3 = vpop.f32.mrf.mxu0 }
 0x12c   : > { %v899_v15 = vadd.f32 %v898_v43, %v849_v42  ;;  %v1300_v16 = vadd.f32 %v2600_v51, %v1209_v3 }
 0x12e   : > { %v1258_v60 = vpop.f32.mrf.mxu1  ;;  %v1332_v1 = vadd.f32 %v1300_v16, %v803_v14  ;;  %v1331_v18 = vadd.f32 %v1299_v10, %v899_v15 }
 0x12f   : > { %v1301_v22 = vadd.f32 %v2607_v59, %v1258_v60 }
 0x130   : > { %1364 = vst [vmem:[%s2609_s7 + $0x70] sm:$0xff] %v1332_v1 }
 0x131   : > { %1363 = vst [vmem:[%s2609_s7 + $0x68] sm:$0xff] %v1331_v18 }
 0x132   : > { %v900_v20 = vpop.f32.mrf.mxu3 }
 0x133   : > { %v851_v19 = vpop.f32.mrf.mxu2  ;;  %v1212_v48 = vpop.f32.mrf.mxu0 }
 0x134   : > { %v901_v47 = vadd.f32 %v900_v20, %v851_v19  ;;  %v1302_v21 = vadd.f32 %v2600_v51, %v1212_v48 }
 0x136   : > { %v1261_v24 = vpop.f32.mrf.mxu1  ;;  %v1334_v25 = vadd.f32 %v1302_v21, %v2549_v17  ;;  %v1333_v4 = vadd.f32 %v1301_v22, %v901_v47 }
 0x137   : > { %v1303_v0 = vadd.f32 %v2607_v59, %v1261_v24 }
 0x138   : > { %1366 = vst [vmem:[%s2609_s7 + $0x80] sm:$0xff] %v1334_v25 }
 0x139   : > { %1365 = vst [vmem:[%s2609_s7 + $0x78] sm:$0xff] %v1333_v4 }
 0x13a   : > { %v903_v29 = vpop.f32.mrf.mxu3 }
 0x13b   : > { %v854_v8 = vpop.f32.mrf.mxu2  ;;  %v1214_v31 = vpop.f32.mrf.mxu0 }
 0x13c   : > { %v904_v30 = vadd.f32 %v903_v29, %v854_v8  ;;  %v1304_v34 = vadd.f32 %v2600_v51, %v1214_v31 }
 0x13e   : > { %v1263_v27 = vpop.f32.mrf.mxu1  ;;  %v1336_v28 = vadd.f32 %v1304_v34, %v2552_v23  ;;  %v1335_v38 = vadd.f32 %v1303_v0, %v904_v30 }
 0x13f   : > { %v1305_v49 = vadd.f32 %v2607_v59, %v1263_v27 }
 0x140   : > { %1368 = vst [vmem:[%s2609_s7 + $0x90] sm:$0xff] %v1336_v28 }
 0x141   : > { %1367 = vst [vmem:[%s2609_s7 + $0x88] sm:$0xff] %v1335_v38 }
 0x142   : > { %v905_v39 = vpop.f32.mrf.mxu3 }
 0x143   : > { %v856_v17 = vpop.f32.mrf.mxu2  ;;  %v1217_v44 = vpop.f32.mrf.mxu0 }
 0x144   : > { %v906_v40 = vadd.f32 %v905_v39, %v856_v17  ;;  %v1306_v45 = vadd.f32 %v2600_v51, %v1217_v44 }
 0x146   : > { %v1266_v50 = vpop.f32.mrf.mxu1  ;;  %v1338_v52 = vadd.f32 %v1306_v45, %v2560_v26  ;;  %v1337_v33 = vadd.f32 %v1305_v49, %v906_v40 }
 0x147   : > { %v1307_v56 = vadd.f32 %v2607_v59, %v1266_v50 }
 0x148   : > { %1370 = vst [vmem:[%s2609_s7 + $0xa0] sm:$0xff] %v1338_v52 }
 0x149   : > { %1369 = vst [vmem:[%s2609_s7 + $0x98] sm:$0xff] %v1337_v33 }
 0x14a   : > { %v908_v61 = vpop.f32.mrf.mxu3 }
 0x14b   : > { %v859_v23 = vpop.f32.mrf.mxu2  ;;  %v1219_v55 = vpop.f32.mrf.mxu0 }
 0x14c   : > { %v909_v53 = vadd.f32 %v908_v61, %v859_v23  ;;  %v1308_v57 = vadd.f32 %v2600_v51, %v1219_v55 }
 0x14e   : > { %v1268_v58 = vpop.f32.mrf.mxu1  ;;  %v1340_v62 = vadd.f32 %v1308_v57, %v2567_v32  ;;  %v1339_v63 = vadd.f32 %v1307_v56, %v909_v53 }
 0x14f   : > { %v1309_v6 = vadd.f32 %v2607_v59, %v1268_v58 }
 0x150   : > { %1372 = vst [vmem:[%s2609_s7 + $0xb0] sm:$0xff] %v1340_v62 }
 0x151   : > { %1371 = vst [vmem:[%s2609_s7 + $0xa8] sm:$0xff] %v1339_v63 }
 0x152   : > { %v910_v2 = vpop.f32.mrf.mxu3 }
 0x153   : > { %v861_v26 = vpop.f32.mrf.mxu2  ;;  %v1222_v37 = vpop.f32.mrf.mxu0 }
 0x154   : > { %v911_v36 = vadd.f32 %v910_v2, %v861_v26  ;;  %v1310_v5 = vadd.f32 %v2600_v51, %v1222_v37 }
 0x156   : > { %v1271_v7 = vpop.f32.mrf.mxu1  ;;  %v1342_v9 = vadd.f32 %v1310_v5, %v2575_v35  ;;  %v1341_v11 = vadd.f32 %v1309_v6, %v911_v36 }
 0x157   : > { %v1311_v42 = vadd.f32 %v2607_v59, %v1271_v7 }
 0x158   : > { %1374 = vst [vmem:[%s2609_s7 + $0xc0] sm:$0xff] %v1342_v9 }
 0x159   : > { %1373 = vst [vmem:[%s2609_s7 + $0xb8] sm:$0xff] %v1341_v11 }
 0x15a   : > { %v913_v12 = vpop.f32.mrf.mxu3 }
 0x15b   : > { %v864_v32 = vpop.f32.mrf.mxu2  ;;  %v1224_v14 = vpop.f32.mrf.mxu0 }
 0x15c   : > { %v914_v13 = vadd.f32 %v913_v12, %v864_v32  ;;  %v1312_v43 = vadd.f32 %v2600_v51, %v1224_v14 }
 0x15e   : > { %v1344_v15 = vadd.f32 %v1312_v43, %v2582_v41  ;;  %v1273_v3 = vpop.f32.mrf.mxu1  ;;  %v1343_v10 = vadd.f32 %v1311_v42, %v914_v13 }
 0x15f   : > { %v1313_v19 = vadd.f32 %v2607_v59, %v1273_v3 }
 0x160   : > { %1376 = vst [vmem:[%s2609_s7 + $0xd0] sm:$0xff] %v1344_v15 }
 0x161   : > { %1375 = vst [vmem:[%s2609_s7 + $0xc8] sm:$0xff] %v1343_v10 }
 0x162   : > { %v915_v16 = vpop.f32.mrf.mxu3 }
 0x163   : > { %v866_v35 = vpop.f32.mrf.mxu2  ;;  %v1227_v1 = vpop.f32.mrf.mxu0 }
 0x164   : > { %v916_v60 = vadd.f32 %v915_v16, %v866_v35  ;;  %v1314_v18 = vadd.f32 %v2600_v51, %v1227_v1 }
 0x166   : > { %v1346_v20 = vadd.f32 %v1314_v18, %v2590_v46  ;;  %v1345_v47 = vadd.f32 %v1313_v19, %v916_v60  ;;  %v1276_v41 = vpop.f32.mrf.mxu1 }
 0x167   : > { %v1315_v25 = vadd.f32 %v2607_v59, %v1276_v41 }
 0x168   : > { %1378 = vst [vmem:[%s2609_s7 + $0xe0] sm:$0xff] %v1346_v20 }
 0x169   : > { %1377 = vst [vmem:[%s2609_s7 + $0xd8] sm:$0xff] %v1345_v47 }
 0x16a   : > { %v918_v21 = vpop.f32.mrf.mxu3 }
 0x16b   : > { %v869_v48 = vpop.f32.mrf.mxu2  ;;  %v1229_v24 = vpop.f32.mrf.mxu0 }
 0x16c   : > { %v919_v22 = vadd.f32 %v918_v21, %v869_v48  ;;  %v1316_v4 = vadd.f32 %v2600_v51, %v1229_v24 }
 0x16e   : > { %v1348_v8 = vadd.f32 %v1316_v4, %v2604_v54  ;;  %v1347_v46 = vadd.f32 %v1315_v25, %v919_v22  ;;  %v1278_v31 = vpop.f32.mrf.mxu1 }
 0x16f   : > { %v1317_v51 = vadd.f32 %v2607_v59, %v1278_v31 }
 0x170   : > { %1380 = vst [vmem:[%s2609_s7 + $0xf0] sm:$0xff] %v1348_v8 }
 0x171   : > { %1379 = vst [vmem:[%s2609_s7 + $0xe8] sm:$0xff] %v1347_v46 }
 0x172   : > { %v920_v30 = vpop.f32.mrf.mxu3 }
 0x173   : > { %v871_v29 = vpop.f32.mrf.mxu2 }
 0x174   : > { %v921_v0 = vadd.f32 %v920_v30, %v871_v29 }
 0x176   : > { %v1349_v54 = vadd.f32 %v1317_v51, %v921_v0 }
 0x178   : > { %1381 = vst [vmem:[%s2609_s7 + $0xf8] sm:$0xff] %v1349_v54 }
 0x179   : > { %2027 = shalt.err (!%p2024_p5)
}
 0x17a   : > { %s2080_s27 = smov 256   ;;  %s2081_s7 = smov 16  }
 0x17b   : > { %1942 = dma.vmem_to_hbm [thread:$0]  (%p2152_p4), %s1399_s14, 4096, %s1401_s15, %s1383_s21, %s2080_s27, %s2080_s27, %s2081_s7  }
 0x17c PF: > { %p1948_p6 = scmp.ge.s32.totalorder %s2078_s23, 2  ;;  %s1415_s8 = sand.u32 1, %s2058_s18  }
 0x17d   : > { %s1416_s10 = scalar_lea.sflag [#allocation3], %s1415_s8 }
 0x17e   : > { %p1945_p7 = pnand %p1948_p6, %p2159_p8 }
 0x180   : > { %p1946_p9 = pneg %p1945_p7 }
 0x182   : > { %2053 = dma.done.wait (%p1946_p9), %s1416_s10, 4096  }
 0x183   : > { %2055 = vsyncadd (%p1946_p9), %s1416_s10, 4294963200  ;;  %s18_s23 = sadd.s32 1, %s2078_s23   ;;  %s2741_s18 = smov %s2062_s19 }
 0x184   : > { %p15_p10 = scmp.ge.s32.totalorder %s18_s23, 4   ;;  %s2742_s19 = smov %s2066_s20 }
 0x185   : > { %s2743_s20 = smov %s2165_s6  ;;  %s2744_s21 = smov %s2074_s22 }
 0x186   : > { %s2745_s22 = smov %s2747_s26  ;;  %17 = sbr.rel (!%p15_p10) target bundleno = 4 (0x4), region = 95 }
 0x18b   :  { %1422 = vsyncpa [#allocation3], 1 }
 0x18c   :  { %1424 = vsyncpa [#allocation3 + $0x1], 1 }

</bundles_post_ra>
